<compile_context>
chip_gen: v7x
topology: tpu7x:2x2x1
jax: 0.10.0
libtpu: 0.0.40
codegen_flags: <defaults>
</compile_context>

<pallas_src>
import functools

import jax
import jax.numpy as jnp
from jax.experimental import pallas as pl
from jax.experimental.pallas import tpu as pltpu


@functools.lru_cache(maxsize=None)
def _bf16_elementwise_default():
    """bf16 VPU/EUP exists on v6e / v7x; keep f32 elementwise on v5e / older (no bf16 EUP)."""
    try:
        kind = jax.devices()[0].device_kind.lower()
    except Exception:
        return False
    return ("v6" in kind) or ("v7" in kind) or ("trillium" in kind)


def _recurrent_attention_kernel(x_ref, w_ref, b_ref, out_ref, *,
                                num_valid_keys, bf16_elementwise):
    x = x_ref[...]                      # (3Bp, Hp) bf16, rows = [x_p_j ; x_s_i ; x_o_i]
    w = w_ref[...]                      # (Hp, 3Hp) bf16, gate blocks [i | g | o]
    b = b_ref[...]                      # (1, 3Hp)  f32,  gate blocks [i | g | o]

    three_bp, hp = x.shape
    bp = three_bp // 3

    # ---- fused LSTM gate matmul: one MXU push for all three inputs ----
    gates = jnp.dot(x, w, preferred_element_type=jnp.float32) + b      # (3Bp, 3Hp) f32
    if bf16_elementwise:
        gates = gates.astype(jnp.bfloat16)          # bf16 EUP/VPU path (v6e / v7x only)
    i_g = jax.nn.sigmoid(gates[:, 0:hp])
    g_g = jnp.tanh(gates[:, hp:2 * hp])
    o_g = jax.nn.sigmoid(gates[:, 2 * hp:3 * hp])
    h = (o_g * jnp.tanh(i_g * g_g)).astype(jnp.bfloat16)               # (3Bp, Hp) bf16
    # rows of h: [g_h ; f_s ; f_o]; padded hidden lanes are exactly 0
    # (zero padded weight cols / bias lanes -> preact 0 -> tanh(0) = 0 factor).

    # ---- ONE score matmul for all three attends: S[q, k] = <x_q, h_k> ----
    scores = jax.lax.dot_general(
        x, h, (((1,), (1,)), ((), ())),
        preferred_element_type=jnp.float32)                            # (3Bp, 3Bp) f32

    row = jax.lax.broadcasted_iota(jnp.int32, (three_bp, three_bp), 0)
    col = jax.lax.broadcasted_iota(jnp.int32, (three_bp, three_bp), 1)

    # Pass A mask: x_p rows attend f_s (cols [bp, 2bp)); x_s / x_o rows attend g_h (cols [0, bp)).
    q_is_p = row < bp
    mask_a = (q_is_p & (col >= bp) & (col < 2 * bp)) | (~q_is_p & (col < bp))
    # Pass B mask (queries = x_p rows only): attend f_o (cols [2bp, 3bp)).
    mask_b = col[0:bp] >= 2 * bp

    if num_valid_keys < bp:            # mask padded key (batch) rows only when needed
        key_valid = ((col < num_valid_keys)
                     | ((col >= bp) & (col < bp + num_valid_keys))
                     | ((col >= 2 * bp) & (col < 2 * bp + num_valid_keys)))
        mask_a = mask_a & key_valid
        mask_b = mask_b & key_valid[0:bp]

    def masked_softmax_pv(sc, mask):
        s = jnp.where(mask, sc, jnp.float32(-1e30))
        mx = jnp.max(s, axis=-1, keepdims=True)
        e = jnp.exp(s - mx)
        inv = pl.reciprocal(jnp.sum(e, axis=-1, keepdims=True), approx=True)
        p = (e * inv).astype(jnp.bfloat16)
        return jnp.dot(p, h, preferred_element_type=jnp.float32)       # (M, Hp) f32

    att_a = masked_softmax_pv(scores, mask_a)         # rows: [out_s ; s_p ; p_o]
    att_b = masked_softmax_pv(scores[0:bp], mask_b)   # rows: out_o  (row slice only)

    out_ref[0] = att_a[0:bp].astype(out_ref.dtype)                                  # out_s
    out_ref[1] = ((att_a[bp:2 * bp] + att_a[2 * bp:3 * bp]) * 0.5).astype(out_ref.dtype)  # out_r
    out_ref[2] = att_b.astype(out_ref.dtype)                                        # out_o


def prepare_recurrent_attention_params(w_ih, b_ih, b_hh):
    """One-time LSTM parameter prep (call once per module; reuse across forward calls).

    PyTorch gate order is (i, f, g, o). With zero initial (h0, c0): W_hh never contributes
    and the forget gate is dead, so only the i / g / o blocks are kept, transposed to x@W
    layout, zero-padded to a lane-dense hidden size and cast to bf16.
    Returns (w_pad (Hp, 3Hp) bf16, b_pad (1, 3Hp) f32).
    """
    four_h, H = w_ih.shape
    assert four_h == 4 * H
    Hp = max(128, ((H + 127) // 128) * 128)
    b_sum = (b_ih + b_hh).astype(jnp.float32)

    def gate_w(g):                       # (H, H) rows=out, cols=in -> (Hp, Hp) x@W layout
        return jnp.pad(w_ih[g * H:(g + 1) * H].T, ((0, Hp - H), (0, Hp - H)))

    def gate_b(g):
        return jnp.pad(b_sum[g * H:(g + 1) * H], (0, Hp - H))

    w_pad = jnp.concatenate([gate_w(0), gate_w(2), gate_w(3)], axis=1).astype(jnp.bfloat16)
    b_pad = jnp.concatenate([gate_b(0), gate_b(2), gate_b(3)]).reshape(1, 3 * Hp)
    return w_pad, b_pad


def recurrent_attention(x_s_i, x_p_j, x_o_i, params):
    """x_*: (B, H). params: output of prepare_recurrent_attention_params.
    Returns (out_s, out_r, out_o), each (B, H) in the input dtype."""
    w_pad, b_pad = params
    B, H = x_s_i.shape
    Hp = w_pad.shape[0]
    Bp = ((B + 7) // 8) * 8
    out_dtype = x_s_i.dtype

    # Single fused stack + pad + cast of the activations; rows = [x_p ; x_s ; x_o].
    x_stack = jnp.stack([x_p_j, x_s_i, x_o_i], axis=0)                  # (3, B, H)
    x_cat = jnp.pad(x_stack, ((0, 0), (0, Bp - B), (0, Hp - H)))
    x_cat = x_cat.reshape(3 * Bp, Hp).astype(jnp.bfloat16)              # (3Bp, Hp)

    vmem = pl.BlockSpec(memory_space=pltpu.MemorySpace.VMEM)
    out = pl.pallas_call(
        functools.partial(_recurrent_attention_kernel,
                          num_valid_keys=B,
                          bf16_elementwise=_bf16_elementwise_default()),
        out_shape=jax.ShapeDtypeStruct((3, Bp, Hp), out_dtype),
        in_specs=[vmem, vmem, vmem],
        out_specs=vmem,
    )(x_cat, w_pad, b_pad)

    out = out[:, :B, :H]                 # one slice for all three outputs
    return out[0], out[1], out[2]


def _reference(x_s_i, x_p_j, x_o_i, w_ih, b_ih, b_hh):
    """Pure-JAX f32 reference mirroring the PyTorch forward."""
    H = x_s_i.shape[-1]

    def lstm_hidden(x):
        gates = x @ w_ih.T + b_ih + b_hh
        i = jax.nn.sigmoid(gates[:, :H])
        g = jnp.tanh(gates[:, 2 * H:3 * H])
        o = jax.nn.sigmoid(gates[:, 3 * H:])
        return o * jnp.tanh(i * g)

    g_h, f_s, f_o = lstm_hidden(x_p_j), lstm_hidden(x_s_i), lstm_hidden(x_o_i)

    def attend(q, k):
        return jax.nn.softmax(q @ k.T, axis=1) @ k

    out_r = (attend(x_s_i, g_h) + attend(x_o_i, g_h)) / 2
    return attend(x_p_j, f_s), out_r, attend(x_p_j, f_o)


if __name__ == "__main__":
    B, H = 8, 32  # small shapes; docstring uses Batch x 512 but nhidden is configurable

    key = jax.random.PRNGKey(0)
    k1, k2, k3, kw, kb1, kb2 = jax.random.split(key, 6)

    x_s_i = jax.random.normal(k1, (B, H), dtype=jnp.float32)
    x_p_j = jax.random.normal(k2, (B, H), dtype=jnp.float32)
    x_o_i = jax.random.normal(k3, (B, H), dtype=jnp.float32)

    # PyTorch LSTM param shapes: weight_ih_l0 (4H, H), biases (4H,).
    # W_hh omitted: with zero initial hidden state it never contributes.
    bound = 1.0 / jnp.sqrt(jnp.float32(H))
    w_ih = jax.random.uniform(kw, (4 * H, H), minval=-bound, maxval=bound, dtype=jnp.float32)
    b_ih = jax.random.uniform(kb1, (4 * H,), minval=-bound, maxval=bound, dtype=jnp.float32)
    b_hh = jax.random.uniform(kb2, (4 * H,), minval=-bound, maxval=bound, dtype=jnp.float32)
    # TODO(synk): self.rnn_r is defined in __init__ but never used in forward; intentionally omitted.

    # One-time parameter prep (hoisted out of the per-call path per perf review).
    params = prepare_recurrent_attention_params(w_ih, b_ih, b_hh)
    params = jax.block_until_ready(params)

    fwd = jax.jit(recurrent_attention)
    out_s, out_r, out_o = fwd(x_s_i, x_p_j, x_o_i, params)
    jax.block_until_ready((out_s, out_r, out_o))

    ref_s, ref_r, ref_o = _reference(x_s_i, x_p_j, x_o_i, w_ih, b_ih, b_hh)
    # Tolerance relaxed for bf16 matmul operands + approx reciprocal (f32 accumulation kept).
    assert jnp.allclose(out_s, ref_s, atol=5e-2, rtol=5e-2)
    assert jnp.allclose(out_r, ref_r, atol=5e-2, rtol=5e-2)
    assert jnp.allclose(out_o, ref_o, atol=5e-2, rtol=5e-2)

    print("KERNEL_OK")
</pallas_src>

<mosaic_0001>
module attributes {stable_mosaic.version = 11 : i64} {
  func.func @_recurrent_attention_kernel(%arg0: memref<24x128xbf16, #tpu.memory_space<vmem>>, %arg1: memref<128x384xbf16, #tpu.memory_space<vmem>>, %arg2: memref<1x384xf32, #tpu.memory_space<vmem>>, %arg3: memref<3x8x128xf32, #tpu.memory_space<vmem>>) attributes {dimension_semantics = [], scalar_prefetch = 0 : i64, scratch_operands = 0 : i64, tpu.core_type = #tpu.core_type<tc>} {
    %c0 = arith.constant 0 : index
    %c0_0 = arith.constant 0 : index
    %0 = vector.load %arg0[%c0, %c0_0] : memref<24x128xbf16, #tpu.memory_space<vmem>>, vector<24x128xbf16>
    %c0_1 = arith.constant 0 : index
    %c0_2 = arith.constant 0 : index
    %1 = vector.load %arg1[%c0_1, %c0_2] : memref<128x384xbf16, #tpu.memory_space<vmem>>, vector<128x384xbf16>
    %c0_3 = arith.constant 0 : index
    %c0_4 = arith.constant 0 : index
    %2 = vector.load %arg2[%c0_3, %c0_4] : memref<1x384xf32, #tpu.memory_space<vmem>>, vector<1x384xf32>
    %cst = arith.constant dense<0.000000e+00> : vector<24x384xf32>
    %3 = tpu.matmul %0, %1, %cst {dimension_numbers = #tpu.dot_dimension_numbers<[1], [0], [0], [1], [0, 0, 1, 1], [], []>} : vector<24x128xbf16>, vector<128x384xbf16>, vector<24x384xf32> -> vector<24x384xf32>
    %4 = vector.broadcast %2 : vector<1x384xf32> to vector<24x384xf32>
    %5 = arith.addf %3, %4 : vector<24x384xf32>
    %6 = vector.extract_strided_slice %5 {offsets = [0, 0], sizes = [24, 128], strides = [1, 1]} : vector<24x384xf32> to vector<24x128xf32>
    %7 = arith.negf %6 : vector<24x128xf32>
    %8 = math.exp %7 : vector<24x128xf32>
    %cst_5 = arith.constant 1.000000e+00 : f32
    %9 = vector.broadcast %cst_5 : f32 to vector<24x128xf32>
    %10 = arith.addf %9, %8 : vector<24x128xf32>
    %11 = arith.divf %9, %10 : vector<24x128xf32>
    %12 = vector.extract_strided_slice %5 {offsets = [0, 128], sizes = [24, 128], strides = [1, 1]} : vector<24x384xf32> to vector<24x128xf32>
    %13 = math.tanh %12 : vector<24x128xf32>
    %14 = vector.extract_strided_slice %5 {offsets = [0, 256], sizes = [24, 128], strides = [1, 1]} : vector<24x384xf32> to vector<24x128xf32>
    %15 = arith.negf %14 : vector<24x128xf32>
    %16 = math.exp %15 : vector<24x128xf32>
    %cst_6 = arith.constant 1.000000e+00 : f32
    %17 = vector.broadcast %cst_6 : f32 to vector<24x128xf32>
    %18 = arith.addf %17, %16 : vector<24x128xf32>
    %19 = arith.divf %17, %18 : vector<24x128xf32>
    %20 = arith.mulf %11, %13 : vector<24x128xf32>
    %21 = math.tanh %20 : vector<24x128xf32>
    %22 = arith.mulf %19, %21 : vector<24x128xf32>
    %23 = arith.truncf %22 : vector<24x128xf32> to vector<24x128xbf16>
    %cst_7 = arith.constant dense<0.000000e+00> : vector<24x24xf32>
    %24 = tpu.matmul %0, %23, %cst_7 {dimension_numbers = #tpu.dot_dimension_numbers<[1], [1], [0], [0], [0, 0, 1, 0], [], []>} : vector<24x128xbf16>, vector<24x128xbf16>, vector<24x24xf32> -> vector<24x24xf32>
    %25 = tpu.iota {dimensions = array<i32: 0>} : vector<24x24xi32>
    %26 = tpu.iota {dimensions = array<i32: 1>} : vector<24x24xi32>
    %c8_i32 = arith.constant 8 : i32
    %27 = vector.broadcast %c8_i32 : i32 to vector<24x24xi32>
    %28 = arith.cmpi slt, %25, %27 : vector<24x24xi32>
    %c8_i32_8 = arith.constant 8 : i32
    %29 = vector.broadcast %c8_i32_8 : i32 to vector<24x24xi32>
    %30 = arith.cmpi sge, %26, %29 : vector<24x24xi32>
    %31 = arith.andi %28, %30 : vector<24x24xi1>
    %c16_i32 = arith.constant 16 : i32
    %32 = vector.broadcast %c16_i32 : i32 to vector<24x24xi32>
    %33 = arith.cmpi slt, %26, %32 : vector<24x24xi32>
    %34 = arith.andi %31, %33 : vector<24x24xi1>
    %cst_9 = arith.constant dense<true> : vector<24x24xi1>
    %35 = arith.xori %28, %cst_9 : vector<24x24xi1>
    %c8_i32_10 = arith.constant 8 : i32
    %36 = vector.broadcast %c8_i32_10 : i32 to vector<24x24xi32>
    %37 = arith.cmpi slt, %26, %36 : vector<24x24xi32>
    %38 = arith.andi %35, %37 : vector<24x24xi1>
    %39 = arith.ori %34, %38 : vector<24x24xi1>
    %40 = vector.extract_strided_slice %26 {offsets = [0, 0], sizes = [8, 24], strides = [1, 1]} : vector<24x24xi32> to vector<8x24xi32>
    %c16_i32_11 = arith.constant 16 : i32
    %41 = vector.broadcast %c16_i32_11 : i32 to vector<8x24xi32>
    %42 = arith.cmpi sge, %40, %41 : vector<8x24xi32>
    %cst_12 = arith.constant -1.000000e+30 : f32
    %43 = vector.broadcast %cst_12 : f32 to vector<24x24xf32>
    %44 = arith.select %39, %24, %43 : vector<24x24xi1>, vector<24x24xf32>
    %cst_13 = arith.constant dense<0xFF800000> : vector<24xf32>
    %45 = vector.multi_reduction <maximumf>, %44, %cst_13 [1] : vector<24x24xf32> to vector<24xf32>
    %46 = vector.shape_cast %45 : vector<24xf32> to vector<24x1xf32>
    %47 = vector.broadcast %46 : vector<24x1xf32> to vector<24x24xf32>
    %48 = arith.subf %44, %47 : vector<24x24xf32>
    %49 = math.exp %48 : vector<24x24xf32>
    %cst_14 = arith.constant dense<0.000000e+00> : vector<24xf32>
    %50 = vector.multi_reduction <add>, %49, %cst_14 [1] : vector<24x24xf32> to vector<24xf32>
    %51 = vector.shape_cast %50 : vector<24xf32> to vector<24x1xf32>
    %52 = tpu.reciprocal %51 {approx = true} : vector<24x1xf32> -> vector<24x1xf32>
    %53 = vector.broadcast %52 : vector<24x1xf32> to vector<24x24xf32>
    %54 = arith.mulf %49, %53 : vector<24x24xf32>
    %55 = arith.truncf %54 : vector<24x24xf32> to vector<24x24xbf16>
    %cst_15 = arith.constant dense<0.000000e+00> : vector<24x128xf32>
    %56 = tpu.matmul %55, %23, %cst_15 {dimension_numbers = #tpu.dot_dimension_numbers<[1], [0], [0], [1], [0, 0, 1, 1], [], []>} : vector<24x24xbf16>, vector<24x128xbf16>, vector<24x128xf32> -> vector<24x128xf32>
    %57 = vector.extract_strided_slice %24 {offsets = [0, 0], sizes = [8, 24], strides = [1, 1]} : vector<24x24xf32> to vector<8x24xf32>
    %cst_16 = arith.constant -1.000000e+30 : f32
    %58 = vector.broadcast %cst_16 : f32 to vector<8x24xf32>
    %59 = arith.select %42, %57, %58 : vector<8x24xi1>, vector<8x24xf32>
    %cst_17 = arith.constant dense<0xFF800000> : vector<8xf32>
    %60 = vector.multi_reduction <maximumf>, %59, %cst_17 [1] : vector<8x24xf32> to vector<8xf32>
    %61 = vector.shape_cast %60 : vector<8xf32> to vector<8x1xf32>
    %62 = vector.broadcast %61 : vector<8x1xf32> to vector<8x24xf32>
    %63 = arith.subf %59, %62 : vector<8x24xf32>
    %64 = math.exp %63 : vector<8x24xf32>
    %cst_18 = arith.constant dense<0.000000e+00> : vector<8xf32>
    %65 = vector.multi_reduction <add>, %64, %cst_18 [1] : vector<8x24xf32> to vector<8xf32>
    %66 = vector.shape_cast %65 : vector<8xf32> to vector<8x1xf32>
    %67 = tpu.reciprocal %66 {approx = true} : vector<8x1xf32> -> vector<8x1xf32>
    %68 = vector.broadcast %67 : vector<8x1xf32> to vector<8x24xf32>
    %69 = arith.mulf %64, %68 : vector<8x24xf32>
    %70 = arith.truncf %69 : vector<8x24xf32> to vector<8x24xbf16>
    %cst_19 = arith.constant dense<0.000000e+00> : vector<8x128xf32>
    %71 = tpu.matmul %70, %23, %cst_19 {dimension_numbers = #tpu.dot_dimension_numbers<[1], [0], [0], [1], [0, 0, 1, 1], [], []>} : vector<8x24xbf16>, vector<24x128xbf16>, vector<8x128xf32> -> vector<8x128xf32>
    %72 = vector.extract_strided_slice %56 {offsets = [0, 0], sizes = [8, 128], strides = [1, 1]} : vector<24x128xf32> to vector<8x128xf32>
    %c0_20 = arith.constant 0 : index
    %c0_21 = arith.constant 0 : index
    %c0_22 = arith.constant 0 : index
    %73 = vector.load %arg3[%c0_20, %c0_21, %c0_22] : memref<3x8x128xf32, #tpu.memory_space<vmem>>, vector<1x8x128xf32>
    %74 = vector.shape_cast %73 : vector<1x8x128xf32> to vector<8x128xf32>
    %75 = vector.shape_cast %72 : vector<8x128xf32> to vector<1x8x128xf32>
    tpu.vector_store %arg3[%c0_20, %c0_21, %c0_22], %75 {strides = array<i32>} : memref<3x8x128xf32, #tpu.memory_space<vmem>>, vector<1x8x128xf32>,
    %76 = vector.extract_strided_slice %56 {offsets = [8, 0], sizes = [8, 128], strides = [1, 1]} : vector<24x128xf32> to vector<8x128xf32>
    %77 = vector.extract_strided_slice %56 {offsets = [16, 0], sizes = [8, 128], strides = [1, 1]} : vector<24x128xf32> to vector<8x128xf32>
    %78 = arith.addf %76, %77 : vector<8x128xf32>
    %cst_23 = arith.constant 5.000000e-01 : f32
    %79 = vector.broadcast %cst_23 : f32 to vector<8x128xf32>
    %80 = arith.mulf %78, %79 : vector<8x128xf32>
    %c1 = arith.constant 1 : index
    %c0_24 = arith.constant 0 : index
    %c0_25 = arith.constant 0 : index
    %81 = vector.load %arg3[%c1, %c0_24, %c0_25] : memref<3x8x128xf32, #tpu.memory_space<vmem>>, vector<1x8x128xf32>
    %82 = vector.shape_cast %81 : vector<1x8x128xf32> to vector<8x128xf32>
    %83 = vector.shape_cast %80 : vector<8x128xf32> to vector<1x8x128xf32>
    tpu.vector_store %arg3[%c1, %c0_24, %c0_25], %83 {strides = array<i32>} : memref<3x8x128xf32, #tpu.memory_space<vmem>>, vector<1x8x128xf32>,
    %c2 = arith.constant 2 : index
    %c0_26 = arith.constant 0 : index
    %c0_27 = arith.constant 0 : index
    %84 = vector.load %arg3[%c2, %c0_26, %c0_27] : memref<3x8x128xf32, #tpu.memory_space<vmem>>, vector<1x8x128xf32>
    %85 = vector.shape_cast %84 : vector<1x8x128xf32> to vector<8x128xf32>
    %86 = vector.shape_cast %71 : vector<8x128xf32> to vector<1x8x128xf32>
    tpu.vector_store %arg3[%c2, %c0_26, %c0_27], %86 {strides = array<i32>} : memref<3x8x128xf32, #tpu.memory_space<vmem>>, vector<1x8x128xf32>,
    return
  }
}

</mosaic_0001>

<bundles_post_ra>
// kernel: recurrent_attention.1
= control target key start
LH: loop header
LB: loop body
LE: loop exit
PB: predicated region body
PF: predicated region fallthrough
CT: control target
= control target key end

     0   :  { %8 = vsyncpa [#allocation3], 0  ;;  %s828_s12 = smov [#allocation2]   ;;  %s913_s0 = inlined_call_operand.vmem [shape: bf16[24,128], index: 0, kind: input, shape index: {}]   ;;  %s914_s1 = inlined_call_operand.hbm [shape: bf16[128,384], index: 1, kind: input, shape index: {}]   ;;  %s915_s2 = inlined_call_operand.vmem [shape: f32[1,384], index: 2, kind: input, shape index: {}]   ;;  %s916_s3 = inlined_call_operand.vmem [shape: f32[3,8,128], index: 3, kind: output, shape index: {}]  }
   0x1   :  { %s16_s13 = sshll.u32 %s828_s12, 4  ;;  %s804_s16 = scalar_lea.hbm %s914_s1, 3072  ;;  %s17_s13 = int_to_ptr.vmem [resolvable:$true] %s16_s13 }
   0x2   :  { %p805_p0 = scmp.ne.s32.totalorder %s914_s1, %s804_s16  ;;  %p808_p1 = scmp.lt.u32.totalorder %s804_s16, %s914_s1 }
   0x4   :  { %p810_p2 = pnand %p808_p1, %p805_p0 }
   0x6   :  { %813 = shalt.err (!%p810_p2)
}
   0x7   :  { %s814_s21 = scalar_lea.vmem %s17_s13, 3072  ;;  %p819_p4 = scmp.lt.s32.totalorder %s17_s13, %s17_s13 }
   0x8   :  { %p815_p3 = scmp.ne.s32.totalorder %s17_s13, %s814_s21  ;;  %p820_p5 = scmp.lt.s32.totalorder %s814_s21, %s814_s21 }
   0xa   :  { %p821_p6 = por %p820_p5, %p819_p4 }
   0xc   :  { %p822_p7 = pnand %p821_p6, %p815_p3 }
   0xe   :  { %825 = shalt.err (!%p822_p7)
}
   0xf   :  { %s829_s22 = smov 192   ;;  %s830_s23 = smov 12  }
  0x10   :  { %22 = dma.hbm_to_vmem [thread:$0]  %s914_s1, 3072, %s17_s13, [#allocation3], %s829_s22, %s829_s22, %s830_s23  }
  0x11   :  { %826 = dma.done.wait [#allocation3], 3072  }
  0x12   :  { %827 = vsyncadd [#allocation3], 4294964224  ;;  %v831_v0 = vmov 0   ;;  %v718_v1 = vld [vmem:[#allocation2 + $0x4] ss:$12 sps:$4 sm:$0xff]   ;;  %v66_v27 = vlaneseq  ;;  %vm489_vm0 = vcmask 1043456  }
  0x13   :  { %251 = vmatprep.mubr.bf16.mxu0 %v831_v0  ;;  %v720_v2 = vld [vmem:[#allocation2] ss:$12 sps:$4 sm:$0xff]   ;;  %219 = vmatprep.subr.bf16.mxu0 %v718_v1  ;;  %v721_v3 = vld [vmem:[#allocation2 + $0x1c] ss:$12 sps:$4 sm:$0xff]   ;;  %v723_v4 = vld [vmem:[#allocation2 + $0x18] ss:$12 sps:$4 sm:$0xff]  }
  0x14   :  { %220 = vmatpush1.bf16.msra.mxu0 %v720_v2  ;;  %v724_v5 = vld [vmem:[#allocation2 + $0x34] ss:$12 sps:$4 sm:$0xff]   ;;  %v726_v7 = vld [vmem:[#allocation2 + $0x30] ss:$12 sps:$4 sm:$0xff]   ;;  %v728_v9 = vld [vmem:[#allocation2 + $0x4c] ss:$12 sps:$4 sm:$0xff]  }
  0x15   :  { %221 = vmatprep.subr.bf16.mxu0 %v721_v3  ;;  %v727_v6 = vld [vmem:[#allocation2 + $0x8] ss:$12 sps:$4 sm:$0xff]   ;;  %v731_v8 = vld [vmem:[#allocation2 + $0x20] ss:$12 sps:$4 sm:$0xff]   ;;  %v735_v10 = vld [vmem:[#allocation2 + $0x38] ss:$12 sps:$4 sm:$0xff]  }
  0x16   :  { %667 = vmatprep.subr.bf16.mxu1 %v727_v6  ;;  %v730_v11 = vld [vmem:[#allocation2 + $0x48] ss:$12 sps:$4 sm:$0xff]   ;;  %v732_v12 = vld [vmem:[#allocation2 + $0x64] ss:$12 sps:$4 sm:$0xff]   ;;  %v734_v14 = vld [vmem:[#allocation2 + $0x60] ss:$12 sps:$4 sm:$0xff]  }
  0x17   :  { %668 = vmatpush3.bf16.msra.mxu1 %v727_v6  ;;  %v739_v13 = vld [vmem:[#allocation2 + $0x50] ss:$12 sps:$4 sm:$0xff]   ;;  %v743_v16 = vld [vmem:[#allocation2 + $0x68] ss:$12 sps:$4 sm:$0xff]   ;;  %v738_v17 = vld [vmem:[#allocation2 + $0x78] ss:$12 sps:$4 sm:$0xff]  }
  0x18   :  { %222 = vmatpush1.bf16.msra.mxu0 %v723_v4  ;;  %669 = vmatprep.subr.bf16.mxu1 %v731_v8  ;;  %v736_v15 = vld [vmem:[#allocation2 + $0x7c] ss:$12 sps:$4 sm:$0xff]   ;;  %v748_v18 = vld [vmem:[%s913_s0] sm:$0xff]   ;;  %v744_v22 = vld [vmem:[#allocation2 + $0xac] ss:$12 sps:$4 sm:$0xff]   ;;  %v67_v28 = vshrl.u32 %v66_v27, 7 }
  0x19   :  { %223 = vmatprep.subr.bf16.mxu0 %v724_v5  ;;  %v740_v19 = vld [vmem:[#allocation2 + $0x94] ss:$12 sps:$4 sm:$0xff]   ;;  %683 = vmatprep.mubr.bf16.mxu1 %v748_v18  ;;  %v742_v21 = vld [vmem:[#allocation2 + $0x90] ss:$12 sps:$4 sm:$0xff]   ;;  %v749_v23 = vld [vmem:[#allocation2 + $0x98] ss:$12 sps:$4 sm:$0xff]  }
  0x1a   :  { %v747_v20 = vld [vmem:[#allocation2 + $0x80] ss:$12 sps:$4 sm:$0xff]   ;;  %v746_v24 = vld [vmem:[#allocation2 + $0xa8] ss:$12 sps:$4 sm:$0xff]   ;;  %v750_v25 = vld [vmem:[#allocation2 + $0xb0] ss:$12 sps:$4 sm:$0xff]  }
  0x1b   :  { %670 = vmatpush3.bf16.msra.mxu1 %v731_v8  ;;  %v872_v26 = vld [vmem:[%s913_s0 + $0x8] ss:$0 sps:$4 sm:$0xff]   ;;  %v68_v29 = vsub.s32 0, %v67_v28  ;;  %v64_v30 = vld [vmem:[%s915_s2] sm:$0x7]  ;;  %v76_v32 = vsub.s32 2, %v67_v28 }
  0x1c   :  { %224 = vmatpush1.bf16.msra.mxu0 %v726_v7  ;;  %671 = vmatprep.subr.bf16.mxu1 %v735_v10  ;;  %v72_v42 = vsub.s32 1, %v67_v28  ;;  %vm447_vm4 = vcmask 195584   ;;  %vm833_vm7 = vmmov 0  }
  0x1d   :  { %225 = vmatprep.subr.bf16.mxu0 %v728_v9  ;;  %v69_v31 = vrot.slane %v64_v30, %v68_v29  ;;  %v77_v37 = vrot.slane %v64_v30, %v76_v32 }
  0x1e   :  { %v73_v51 = vrot.slane %v64_v30, %v72_v42 }
  0x1f   :  { %672 = vmatpush3.bf16.msra.mxu1 %v735_v10 }
  0x20   :  { %226 = vmatpush1.bf16.msra.mxu0 %v730_v11  ;;  %673 = vmatprep.subr.bf16.mxu1 %v739_v13 }
  0x21   :  { %227 = vmatprep.subr.bf16.mxu0 %v732_v12 }
  0x23   :  { %674 = vmatpush3.bf16.msra.mxu1 %v739_v13 }
  0x24   :  { %228 = vmatpush1.bf16.msra.mxu0 %v734_v14  ;;  %675 = vmatprep.subr.bf16.mxu1 %v743_v16 }
  0x25   :  { %229 = vmatprep.subr.bf16.mxu0 %v736_v15 }
  0x27   :  { %676 = vmatpush3.bf16.msra.mxu1 %v743_v16 }
  0x28   :  { %230 = vmatpush1.bf16.msra.mxu0 %v738_v17  ;;  %677 = vmatprep.subr.bf16.mxu1 %v747_v20 }
  0x29   :  { %231 = vmatprep.subr.bf16.mxu0 %v740_v19 }
  0x2b   :  { %678 = vmatpush3.bf16.msra.mxu1 %v747_v20 }
  0x2c   :  { %232 = vmatpush1.bf16.msra.mxu0 %v742_v21  ;;  %679 = vmatprep.subr.bf16.mxu1 %v749_v23 }
  0x2d   :  { %233 = vmatprep.subr.bf16.mxu0 %v744_v22 }
  0x2f   :  { %680 = vmatpush3.bf16.msra.mxu1 %v749_v23 }
  0x30   :  { %234 = vmatpush1.bf16.msra.mxu0 %v746_v24  ;;  %681 = vmatprep.subr.bf16.mxu1 %v750_v25 }
  0x33   :  { %252 = vmatmul.mubr.bf16.vlgmr.msra.gmra.mrb[0].mxu0 %v748_v18  ;;  %682 = vmatpush3.bf16.msra.mxu1 %v750_v25 }
  0x34   :  { %261 = vmatprep.mubr.bf16.mxu0 %v831_v0 }
  0x36   :  { %684 = vmatmul.mubr.bf16.vlgmr.msra.gmra.mrb[0].mxu1 %v872_v26 }
  0x3b   :  { %262 = vmatmul.mubr.bf16.gmra.mrb[4].mxu0 %v872_v26 }
  0x3c   :  { %691 = vmatprep.mubr.bf16.mxu0 %v748_v18 }
 0x106   :  { %v253_v33 = vpop.f32.mrb[0].mxu0 }
 0x107   :  { %v254_v34 = vadd.f32 %v253_v33, %v69_v31  ;;  %v255_v35 = vpop.f32.mrb[1].mxu0 }
 0x108   :  { %v257_v36 = vpop.f32.mrb[2].mxu0  ;;  %v256_v58 = vadd.f32 %v255_v35, %v73_v51 }
 0x109   :  { %v635_v38 = vmul.f32 -1.442695, %v254_v34  ;;  %v258_v39 = vadd.f32 %v257_v36, %v69_v31  ;;  %v259_v40 = vpop.f32.mrb[3].mxu0  ;;  %v685_v41 = vpop.f32.mrb[0].mxu1  ;;  %v421_v34 = vand.u32 127, %v66_v27 }
 0x10a   :  { %v304_v44 = vpop.f32.mrb[1].mxu1  ;;  %v313_v59 = vadd.f32 %v685_v41, %v77_v37  ;;  %v260_v61 = vadd.f32 %v259_v40, %v73_v51 }
 0x10b   :  { %752 = vpow2.f32 %v635_v38  ;;  %v636_v43 = vmul.f32 -1.442695, %v258_v39  ;;  %v305_v45 = vadd.f32 %v304_v44, %v77_v37  ;;  %v686_v46 = vpop.f32.mrb[2].mxu1  ;;  %vm425_vm1 = vcmp.ge.s32.totalorder %v421_v34, 8 }
 0x10c   :  { %v307_v47 = vpop.f32.mrb[3].mxu1  ;;  %v640_v0 = vmul.f32 -1.442695, %v313_v59  ;;  %vm429_vm2 = vcmp.lt.s32.totalorder %v421_v34, 16  ;;  %vm436_vm3 = vcmp.lt.s32.totalorder %v421_v34, 8  ;;  %vm443_vm6 = vcmp.ge.s32.totalorder %v421_v34, 16 }
 0x10d   :  { %754 = vpow2.f32 %v636_v43  ;;  %v638_v49 = vmul.f32 -1.442695, %v305_v45  ;;  %v308_v50 = vadd.f32 %v307_v47, %v77_v37  ;;  %vm430_vm5 = vmand %vm425_vm1, %vm429_vm2 }
 0x10e   :  { %v263_v48 = vpop.f32.mrb[4].mxu0 }
 0x10f   :  { %v264_v52 = vadd.f32 %v263_v48, %v69_v31  ;;  %v265_v53 = vpop.f32.mrb[5].mxu0  ;;  %v639_v57 = vmul.f32 -1.442695, %v308_v50  ;;  %756 = vpow2.f32 %v638_v49 }
 0x110   :  { %v267_v54 = vpop.f32.mrb[6].mxu0  ;;  %v266_v2 = vadd.f32 %v265_v53, %v73_v51 }
 0x111   :  { %v637_v55 = vmul.f32 -1.442695, %v264_v52  ;;  %v268_v56 = vpop.f32.mrb[7].mxu0 }
 0x113   :  { %758 = vpow2.f32 %v637_v55 }
 0x114   :  { %760 = vpow2.f32 %v639_v57 }
 0x115   :  { %v753_v60 = vpop.eup %752  ;;  %762 = vtanh.f32 %v256_v58 }
 0x116   :  { %v327_v62 = vadd.f32 1.0, %v753_v60 }
 0x117   :  { %v755_v63 = vpop.eup %754 }
 0x118   :  { %764 = vrcp.f32 %v327_v62  ;;  %v328_v1 = vadd.f32 1.0, %v755_v63 }
 0x119   :  { %766 = vtanh.f32 %v260_v61  ;;  %v757_v3 = vpop.eup %756 }
 0x11a   :  { %768 = vrcp.f32 %v328_v1  ;;  %v348_v7 = vadd.f32 1.0, %v757_v3  ;;  %v832_v1 = vmov 0.0  }
 0x11b   :  { %770 = vpow2.f32 %v640_v0 }
 0x11c   :  { %772 = vtanh.f32 %v266_v2 }
 0x11d   :  { %v759_v4 = vpop.eup %758 }
 0x11e   :  { %v329_v5 = vadd.f32 1.0, %v759_v4  ;;  %v761_v6 = vpop.eup %760 }
 0x11f   :  { %v763_v8 = vpop.eup %762  ;;  %v349_v10 = vadd.f32 1.0, %v761_v6 }
 0x120   :  { %774 = vrcp.f32 %v329_v5 }
 0x121   :  { %776 = vrcp.f32 %v348_v7 }
 0x122   :  { %v765_v9 = vpop.eup %764 }
 0x123   :  { %v767_v11 = vpop.eup %766  ;;  %v357_v12 = vmul.f32 %v765_v9, %v763_v8 }
 0x124   :  { %v769_v13 = vpop.eup %768 }
 0x125   :  { %v771_v14 = vpop.eup %770  ;;  %778 = vtanh.f32 %v357_v12  ;;  %v358_v15 = vmul.f32 %v769_v13, %v767_v11 }
 0x126   :  { %780 = vrcp.f32 %v349_v10  ;;  %v350_v16 = vadd.f32 1.0, %v771_v14  ;;  %v773_v17 = vpop.eup %772 }
 0x127   :  { %782 = vtanh.f32 %v358_v15 }
 0x128   :  { %784 = vrcp.f32 %v350_v16 }
 0x12a   :  { %v775_v18 = vpop.eup %774 }
 0x12b   :  { %v359_v19 = vmul.f32 %v775_v18, %v773_v17  ;;  %v777_v20 = vpop.eup %776 }
 0x12d   :  { %786 = vtanh.f32 %v359_v19 }
 0x12f   :  { %v779_v21 = vpop.eup %778 }
 0x130   :  { %v781_v22 = vpop.eup %780  ;;  %v363_v23 = vmul.f32 %v779_v21, %v777_v20 }
 0x131   :  { %v783_v24 = vpop.eup %782 }
 0x132   :  { %v364_v25 = vmul.f32 %v783_v24, %v781_v22  ;;  %v785_v29 = vpop.eup %784 }
 0x134   :  { %v880_v28 = vpack.c.bf16 %v364_v25, %v363_v23 }
 0x136   :  { %687 = vmatprep.subr.bf16.mxu0 %v880_v28  ;;  %695 = vmatprep.subr.bf16.mxu1 %v880_v28 }
 0x137   :  { %v787_v30 = vpop.eup %786  ;;  %688 = vmatpush3.bf16.xpose.msra.mxu0 %v880_v28  ;;  %696 = vmatpush3.bf16.msra.mxu1 %v880_v28 }
 0x138   :  { %v365_v31 = vmul.f32 %v787_v30, %v785_v29 }
 0x13a   :  { %v367_v32 = vpack.c.bf16 %v365_v31, %v365_v31 }
 0x13c   :  { %689 = vmatprep.subr.bf16.mxu0 %v367_v32  ;;  %711 = vmatprep.subr.msk.bf16.mxu1 %vm489_vm0, %v367_v32  ;;  %v886_v33 = vsel %vm489_vm0, %v367_v32, 0 }
 0x13d   :  { %698 = vmatpush3.bf16.msra.mxu1 %v886_v33 }
 0x13e   :  { %703 = vmatprep.subr.bf16.mxu1 %v832_v1 }
 0x13f   :  { %690 = vmatpush3.bf16.xpose.msra.mxu0 %v367_v32 }
 0x146   :  { %692 = vmatmul.mubr.bf16.vlgmr.msra.gmra.mrb[8].mxu0 %v872_v26 }
 0x219   :  { %v693_v35 = vpop.f32.mrb[8].mxu0 }
 0x21a   :  { %v446_v36 = vsel %vm436_vm3, %v693_v35, -1e+30  ;;  %v402_v37 = vpop.f32.mrb[9].mxu0 }
 0x21b   :  { %v694_v38 = vpop.f32.mrb[10].mxu0  ;;  %v454_v39 = vsel %vm447_vm4, %v446_v36, -inf  ;;  %v444_v40 = vsel %vm430_vm5, %v402_v37, -1e+30  ;;  %v541_v26 = vsel %vm443_vm6, %v402_v37, -1e+30 }
 0x21c   :  { %455 = vmax.xlane.f32.xlu1 %v454_v39  ;;  %v405_v41 = vpop.f32.mrb[11].mxu0  ;;  %v448_v42 = vsel %vm447_vm4, %v444_v40, -inf  ;;  %v542_v27 = vsel %vm447_vm4, %v541_v26, -inf }
 0x21d   :  { %v445_v43 = vsel %vm436_vm3, %v405_v41, -1e+30  ;;  %449 = vmax.xlane.f32.xlu0 %v448_v42 }
 0x21e   :  { %v451_v44 = vsel %vm447_vm4, %v445_v43, -inf }
 0x220   :  { %543 = vmax.xlane.f32.xlu1 %v542_v27 }
 0x221   :  { %452 = vmax.xlane.f32.xlu0 %v451_v44 }
 0x2a9   :  { %v456_v45 = vpop.xlane.xlu1 %455 }
 0x2aa   :  { %v459_v46 = vsub.f32 %v446_v36, %v456_v45  ;;  %v450_v47 = vpop.xlane.xlu0 %449 }
 0x2ab   :  { %v457_v48 = vsub.f32 %v444_v40, %v450_v47 }
 0x2ac   :  { %v464_v49 = vmul.f32 1.442695, %v459_v46 }
 0x2ad   :  { %v460_v50 = vmul.f32 1.442695, %v457_v48  ;;  %v544_v51 = vpop.xlane.xlu1 %543 }
 0x2ae   :  { %v545_v52 = vsub.f32 %v541_v26, %v544_v51  ;;  %v453_v53 = vpop.xlane.xlu0 %452 }
 0x2af   :  { %788 = vpow2.f32 %v460_v50  ;;  %v458_v54 = vsub.f32 %v445_v43, %v453_v53 }
 0x2b0   :  { %790 = vpow2.f32 %v464_v49  ;;  %v546_v55 = vmul.f32 1.442695, %v545_v52 }
 0x2b1   :  { %v462_v56 = vmul.f32 1.442695, %v458_v54 }
 0x2b3   :  { %792 = vpow2.f32 %v462_v56 }
 0x2b4   :  { %794 = vpow2.f32 %v546_v55 }
 0x2b9   :  { %v789_v57 = vpop.eup %788 }
 0x2ba   :  { %v466_v58 = vsel %vm447_vm4, %v789_v57, 0.0  ;;  %v791_v59 = vpop.eup %790 }
 0x2bb   :  { %467 = vadd.xlane.f32.xlu0 %v466_v58  ;;  %v472_v61 = vsel %vm447_vm4, %v791_v59, 0.0 }
 0x2bd   :  { %v793_v60 = vpop.eup %792 }
 0x2be   :  { %v469_v62 = vsel %vm447_vm4, %v793_v60, 0.0  ;;  %v795_v63 = vpop.eup %794 }
 0x2bf   :  { %473 = vadd.xlane.f32.xlu0 %v472_v61  ;;  %470 = vadd.xlane.f32.xlu1 %v469_v62  ;;  %v548_v0 = vsel %vm447_vm4, %v795_v63, 0.0 }
 0x2c3   :  { %549 = vadd.xlane.f32.xlu1 %v548_v0 }
 0x348   :  { %v468_v2 = vpop.xlane.xlu0 %467 }
 0x349   :  { %796 = vrcp.f32 %v468_v2 }
 0x34c   :  { %v471_v3 = vpop.xlane.xlu1 %470  ;;  %v474_v4 = vpop.xlane.xlu0 %473 }
 0x34d   :  { %798 = vrcp.f32 %v471_v3 }
 0x34e   :  { %800 = vrcp.f32 %v474_v4 }
 0x350   :  { %v550_v5 = vpop.xlane.xlu1 %549 }
 0x351   :  { %802 = vrcp.f32 %v550_v5 }
 0x353   :  { %v797_v6 = vpop.eup %796 }
 0x354   :  { %v478_v9 = vmul.f32 %v797_v6, %v789_v57 }
 0x357   :  { %v799_v7 = vpop.eup %798 }
 0x358   :  { %v801_v8 = vpop.eup %800  ;;  %v479_v10 = vmul.f32 %v799_v7, %v793_v60 }
 0x359   :  { %v480_v11 = vmul.f32 %v801_v8, %v791_v59 }
 0x35a   :  { %v481_v12 = vpack.c.bf16 %v479_v10, %v478_v9 }
 0x35b   :  { %v482_v13 = vpack.c.bf16 %v480_v11, %v480_v11  ;;  %v803_v14 = vpop.eup %802 }
 0x35c   :  { %699 = vmatprep.mubr.msk.bf16.mxu1 %vm447_vm4, %v481_v12  ;;  %v552_v15 = vmul.f32 %v803_v14, %v795_v63 }
 0x35d   :  { %700 = vmatmul.mubr.msk.bf16.vlgmr.msra.gmra.mrb[4].mxu1 %vm447_vm4, %v482_v13 }
 0x35e   :  { %704 = vmatpush3.bf16.msra.mxu1 %v880_v28  ;;  %707 = vmatprep.mubr.msk.bf16.mxu1 %vm833_vm7, %v832_v1  ;;  %v553_v16 = vpack.c.bf16 %v552_v15, %v552_v15 }
 0x35f   :  { %705 = vmatprep.subr.bf16.mxu1 %v832_v1 }
 0x362   :  { %706 = vmatpush3.bf16.msra.mxu1 %v886_v33 }
 0x365   :  { %708 = vmatmul.mubr.msk.bf16.vlgmr.msra.gmra.mrb[8].mxu1 %vm447_vm4, %v553_v16 }
 0x430   :  { %v701_v17 = vpop.f32.mrb[4].mxu1 }
 0x431   :  { %v527_v18 = vpop.f32.mrb[5].mxu1 }
 0x432   :  { %597 = vst [vmem:[%s916_s3] sm:$0xff] %v527_v18  ;;  %v702_v19 = vpop.f32.mrb[6].mxu1 }
 0x433   :  { %v530_v20 = vpop.f32.mrb[7].mxu1 }
 0x434   :  { %v598_v21 = vadd.f32 %v701_v17, %v530_v20 }
 0x436   :  { %v599_v22 = vmul.f32 0.5, %v598_v21 }
 0x438   :  { %644 = vst [vmem:[%s916_s3 + $0x8] sm:$0xff] %v599_v22  ;;  %v591_v23 = vpop.f32.mrb[8].mxu1 }
 0x439   :  { %645 = vst [vmem:[%s916_s3 + $0x10] sm:$0xff] %v591_v23  ;;  %v709_v24 = vpop.f32.mrb[9].mxu1 }
 0x43a   :  { %v594_v25 = vpop.f32.mrb[10].mxu1 }
 0x43b   :  { %v710_v28 = vpop.f32.mrb[11].mxu1 }
 0x43c   :  { %608 = vsyncpa [#allocation3], 1 }

</bundles_post_ra>
